<compile_context>
chip_gen: v6e
topology: v6e:2x2x1
jax: 0.10.0
libtpu: 0.0.40
codegen_flags: <defaults>
</compile_context>

<pallas_src>
import functools
import math

import jax
import jax.numpy as jnp
from jax import lax
from jax.experimental import pallas as pl
from jax.experimental.pallas import tpu as pltpu


def _attention_head_kernel(x_ref, w_ref, o_ref, *, scale, head_dim):
    """One grid step = one batch element, full sequence, single head.

    x_ref: (1, T, D)    current batch element
    w_ref: (D, C_pad)   fused [Wq | Wk | Wv], zero-padded to a 128-lane multiple
    o_ref: (1, T, H)    attention output for this batch element
    """
    in_dt = x_ref.dtype
    x = x_ref[0]                                     # (T, D)
    T = x.shape[0]

    # ---- fused Q/K/V projection: single lane-dense MXU matmul, f32 acc ----
    qkv = jnp.dot(x, w_ref[...], preferred_element_type=jnp.float32)   # (T, C_pad)
    q = qkv[:, 0 * head_dim:1 * head_dim]            # (T, H) f32
    k = qkv[:, 1 * head_dim:2 * head_dim]
    v = qkv[:, 2 * head_dim:3 * head_dim]

    # ---- scores: contract head_dim directly (no explicit K transpose) -----
    # Scale is 1/sqrt(block_size) to match the PyTorch reference (nonstandard
    # but intentional per the spec).
    s = jnp.einsum('qd,kd->qk', q.astype(in_dt), k.astype(in_dt),
                   preferred_element_type=jnp.float32) * scale          # (T, T)

    # causal mask; large finite negative (safe if tiles get padded later)
    row = lax.broadcasted_iota(jnp.int32, (T, T), 0)
    col = lax.broadcasted_iota(jnp.int32, (T, T), 1)
    s = jnp.where(col <= row, s, -1e30)

    # ---- softmax in f32; approx reciprocal uses the otherwise-idle EUP ----
    m = jnp.max(s, axis=-1, keepdims=True)
    p = jnp.exp(s - m)
    p = p * pl.reciprocal(jnp.sum(p, axis=-1, keepdims=True), approx=True)

    # ---- P @ V with f32 accumulation ---------------------------------------
    out = jnp.einsum('qk,kd->qd', p.astype(in_dt), v.astype(in_dt),
                     preferred_element_type=jnp.float32)                # (T, H)
    o_ref[0] = out.astype(o_ref.dtype)


def attention_head(x, wq, wk, wv, block_size):
    """x: (B, T, D); wq/wk/wv: (D, H) (transposed nn.Linear weights so
    q = x @ wq).  Returns (B, T, H) matching AttentionHead.forward."""
    B, T, D = x.shape
    H = wq.shape[1]
    scale = 1.0 / math.sqrt(block_size)

    # Fuse Q/K/V into one weight (host-side, free): columns [Wq | Wk | Wv],
    # zero-padded up to a multiple of 128 lanes for a full-width MXU pass.
    w_qkv = jnp.concatenate([wq, wk, wv], axis=1)               # (D, 3H)
    c3 = 3 * H
    c_pad = ((c3 + 127) // 128) * 128
    if c_pad != c3:
        w_qkv = jnp.pad(w_qkv, ((0, 0), (0, c_pad - c3)))

    kernel = functools.partial(_attention_head_kernel, scale=scale, head_dim=H)

    return pl.pallas_call(
        kernel,
        out_shape=jax.ShapeDtypeStruct((B, T, H), x.dtype),
        grid_spec=pltpu.PrefetchScalarGridSpec(
            num_scalar_prefetch=0,
            grid=(B,),                                   # one fat step per batch elem
            in_specs=[
                pl.BlockSpec((1, T, D), lambda b: (b, 0, 0)),   # x[b]
                pl.BlockSpec((D, c_pad), lambda b: (0, 0)),     # weights resident
            ],
            out_specs=pl.BlockSpec((1, T, H), lambda b: (b, 0, 0)),
        ),
        compiler_params=pltpu.CompilerParams(
            dimension_semantics=("parallel",),           # batch axis feeds both v7x TCs
            vmem_limit_bytes=32 * 1024 * 1024,
        ),
    )(x, w_qkv)


def _reference(x, wq, wk, wv, block_size):
    """Pure-JAX reference mirroring the PyTorch AttentionHead module."""
    B, T, D = x.shape
    q = x @ wq
    k = x @ wk
    v = x @ wv
    s = (q @ jnp.swapaxes(k, -1, -2)) / math.sqrt(block_size)
    mask = jnp.tril(jnp.ones((T, T), dtype=bool))
    s = jnp.where(mask, s, -jnp.inf)
    p = jax.nn.softmax(s, axis=-1)
    return p @ v


if __name__ == "__main__":
    # config: d_embed=32, n_heads=4, block_size=8 (=> head_dim = 32 // 4 = 8)
    d_embed, n_heads, block_size = 32, 4, 8
    head_dim = d_embed // n_heads
    B, T = 2, block_size

    key = jax.random.PRNGKey(0)
    kx, kq, kk, kv = jax.random.split(key, 4)
    x = jax.random.normal(kx, (B, T, d_embed), dtype=jnp.float32)
    # nn.Linear(d_embed, head_dim, bias=False) weight is (head_dim, d_embed);
    # we store its transpose (d_embed, head_dim) so q = x @ wq.
    bound = 1.0 / math.sqrt(d_embed)
    wq = jax.random.uniform(kq, (d_embed, head_dim), jnp.float32, -bound, bound)
    wk = jax.random.uniform(kk, (d_embed, head_dim), jnp.float32, -bound, bound)
    wv = jax.random.uniform(kv, (d_embed, head_dim), jnp.float32, -bound, bound)

    y = attention_head(x, wq, wk, wv, block_size)
    jax.block_until_ready(y)

    y_ref = _reference(x, wq, wk, wv, block_size)
    assert y.shape == (B, T, head_dim)
    # Tolerance loosened slightly vs. exact f32 because the softmax denominator
    # uses the hardware approximate reciprocal (pl.reciprocal(approx=True)).
    assert jnp.allclose(y, y_ref, atol=5e-3, rtol=5e-3), "mismatch vs reference"

    print("KERNEL_OK")
</pallas_src>

<mosaic_0001>
module attributes {stable_mosaic.version = 11 : i64} {
  func.func @_attention_head_kernel(%arg0: i32, %arg1: memref<1x8x32xf32, #tpu.memory_space<vmem>>, %arg2: memref<32x128xf32, #tpu.memory_space<vmem>>, %arg3: memref<1x8x8xf32, #tpu.memory_space<vmem>>) attributes {dimension_semantics = [#tpu.dimension_semantics<parallel>], iteration_bounds = array<i64: 2>, scalar_prefetch = 0 : i64, scratch_operands = 0 : i64, tpu.core_type = #tpu.core_type<tc>, window_params = [{transform_indices = @transform_0, window_bounds = array<i64: 1, 8, 32>}, {pipeline_mode = #tpu.pipeline_mode<synchronous>, transform_indices = @transform_1, window_bounds = array<i64: 32, 128>}, {transform_indices = @transform_2, window_bounds = array<i64: 1, 8, 8>}]} {
    %c0 = arith.constant 0 : index
    %c0_0 = arith.constant 0 : index
    %c0_1 = arith.constant 0 : index
    %0 = vector.load %arg1[%c0, %c0_0, %c0_1] : memref<1x8x32xf32, #tpu.memory_space<vmem>>, vector<1x8x32xf32>
    %1 = vector.shape_cast %0 : vector<1x8x32xf32> to vector<8x32xf32>
    %c0_2 = arith.constant 0 : index
    %c0_3 = arith.constant 0 : index
    %2 = vector.load %arg2[%c0_2, %c0_3] : memref<32x128xf32, #tpu.memory_space<vmem>>, vector<32x128xf32>
    %cst = arith.constant dense<0.000000e+00> : vector<8x128xf32>
    %3 = tpu.matmul %1, %2, %cst {dimension_numbers = #tpu.dot_dimension_numbers<[1], [0], [0], [1], [0, 0, 1, 1], [], []>} : vector<8x32xf32>, vector<32x128xf32>, vector<8x128xf32> -> vector<8x128xf32>
    %4 = vector.extract_strided_slice %3 {offsets = [0, 0], sizes = [8, 8], strides = [1, 1]} : vector<8x128xf32> to vector<8x8xf32>
    %5 = vector.extract_strided_slice %3 {offsets = [0, 8], sizes = [8, 8], strides = [1, 1]} : vector<8x128xf32> to vector<8x8xf32>
    %6 = vector.extract_strided_slice %3 {offsets = [0, 16], sizes = [8, 8], strides = [1, 1]} : vector<8x128xf32> to vector<8x8xf32>
    "tpu.trace_start"() <{level = 10 : i32, message = "qd,kd->qk"}> : () -> ()
    %cst_4 = arith.constant dense<0.000000e+00> : vector<8x8xf32>
    %7 = tpu.matmul %4, %5, %cst_4 {dimension_numbers = #tpu.dot_dimension_numbers<[1], [1], [0], [0], [0, 0, 1, 0], [], []>} : vector<8x8xf32>, vector<8x8xf32>, vector<8x8xf32> -> vector<8x8xf32>
    "tpu.trace_stop"() : () -> ()
    %cst_5 = arith.constant 0.353553385 : f32
    %8 = vector.broadcast %cst_5 : f32 to vector<8x8xf32>
    %9 = arith.mulf %7, %8 : vector<8x8xf32>
    %10 = tpu.iota {dimensions = array<i32: 0>} : vector<8x8xi32>
    %11 = tpu.iota {dimensions = array<i32: 1>} : vector<8x8xi32>
    %12 = arith.cmpi sle, %11, %10 : vector<8x8xi32>
    %cst_6 = arith.constant -1.000000e+30 : f32
    %13 = vector.broadcast %cst_6 : f32 to vector<8x8xf32>
    %14 = arith.select %12, %9, %13 : vector<8x8xi1>, vector<8x8xf32>
    %cst_7 = arith.constant dense<0xFF800000> : vector<8xf32>
    %15 = vector.multi_reduction <maximumf>, %14, %cst_7 [1] : vector<8x8xf32> to vector<8xf32>
    %16 = vector.shape_cast %15 : vector<8xf32> to vector<8x1xf32>
    %17 = vector.broadcast %16 : vector<8x1xf32> to vector<8x8xf32>
    %18 = arith.subf %14, %17 : vector<8x8xf32>
    %19 = math.exp %18 : vector<8x8xf32>
    %cst_8 = arith.constant dense<0.000000e+00> : vector<8xf32>
    %20 = vector.multi_reduction <add>, %19, %cst_8 [1] : vector<8x8xf32> to vector<8xf32>
    %21 = vector.shape_cast %20 : vector<8xf32> to vector<8x1xf32>
    %22 = tpu.reciprocal %21 {approx = true} : vector<8x1xf32> -> vector<8x1xf32>
    %23 = vector.broadcast %22 : vector<8x1xf32> to vector<8x8xf32>
    %24 = arith.mulf %19, %23 : vector<8x8xf32>
    "tpu.trace_start"() <{level = 10 : i32, message = "qk,kd->qd"}> : () -> ()
    %cst_9 = arith.constant dense<0.000000e+00> : vector<8x8xf32>
    %25 = tpu.matmul %24, %6, %cst_9 {dimension_numbers = #tpu.dot_dimension_numbers<[1], [0], [0], [1], [0, 0, 1, 1], [], []>} : vector<8x8xf32>, vector<8x8xf32>, vector<8x8xf32> -> vector<8x8xf32>
    "tpu.trace_stop"() : () -> ()
    %c0_10 = arith.constant 0 : index
    %c0_11 = arith.constant 0 : index
    %c0_12 = arith.constant 0 : index
    %26 = vector.load %arg3[%c0_10, %c0_11, %c0_12] : memref<1x8x8xf32, #tpu.memory_space<vmem>>, vector<1x8x8xf32>
    %27 = vector.shape_cast %26 : vector<1x8x8xf32> to vector<8x8xf32>
    %28 = vector.shape_cast %25 : vector<8x8xf32> to vector<1x8x8xf32>
    tpu.vector_store %arg3[%c0_10, %c0_11, %c0_12], %28 {strides = array<i32>} : memref<1x8x8xf32, #tpu.memory_space<vmem>>, vector<1x8x8xf32>,
    return
  }
  func.func @transform_0(%arg0: i32) -> (i32, i32, i32) {
    %c0_i32 = arith.constant 0 : i32
    %c0_i32_0 = arith.constant 0 : i32
    %c0_i32_1 = arith.constant 0 : i32
    return %arg0, %c0_i32, %c0_i32_0 : i32, i32, i32
  }
  func.func @transform_1(%arg0: i32) -> (i32, i32) {
    %c0_i32 = arith.constant 0 : i32
    %c0_i32_0 = arith.constant 0 : i32
    %c0_i32_1 = arith.constant 0 : i32
    return %c0_i32, %c0_i32_0 : i32, i32
  }
  func.func @transform_2(%arg0: i32) -> (i32, i32, i32) {
    %c0_i32 = arith.constant 0 : i32
    %c0_i32_0 = arith.constant 0 : i32
    %c0_i32_1 = arith.constant 0 : i32
    return %arg0, %c0_i32, %c0_i32_0 : i32, i32, i32
  }
}

</mosaic_0001>

<bundles_post_ra>
// kernel: tpu_custom_call.1
= control target key start
LH: loop header
LB: loop body
LE: loop exit
PB: predicated region body
PF: predicated region fallthrough
CT: control target
= control target key end

     0   :  { %7 = vsyncpa [#allocation3], 0  ;;  %s962_s0 = inlined_call_operand.hbm [shape: f32[2,8,32], index: 0, kind: input, shape index: {}]   ;;  %s963_s1 = inlined_call_operand.hbm [shape: f32[32,128], index: 1, kind: input, shape index: {}]   ;;  %s964_s2 = inlined_call_operand.hbm [shape: f32[2,8,8], index: 2, kind: output, shape index: {}]  }
   0x1   :  { %9 = vsyncpa [#allocation3 + $0x1], 0 }
   0x2   :  { %10 = vsyncpa [#allocation6], 0 }
   0x3   :  { %11 = vsyncpa [#allocation4], 0 }
   0x4   :  { %13 = vsyncpa [#allocation4 + $0x1], 0  ;;  %s783_s9 = smov 0   ;;  %s785_s10 = smov 0  }
   0x5   :  { %s787_s11 = smov 0   ;;  %s789_s12 = smov 0  }
   0x6 LB: > { %s804_s13 = sadd.s32 4294967295, %s757_s12   ;;  %s520_s14 = sadd.s32 4294967294, %s757_s12   ;;  %s757_s12 = sphi %s789_s12, %s986_s12   ;;  %s753_s11 = sphi %s787_s11, %s985_s11   ;;  %s749_s10 = sphi %s785_s10, %s984_s10   ;;  %s745_s9 = sphi %s783_s9, %s983_s9  }
   0x7   : > { %p39_p0 = scmp.ne.s32.totalorder %s749_s10, %s745_s9  ;;  %p965_p1 = scmp.eq.s32.totalorder %s804_s13, 0 }
   0x8   : > { %p90_p3 = scmp.eq.s32.totalorder %s520_s14, 1  ;;  %p521_p5 = scmp.ge.s32.totalorder %s757_s12, 1 }
   0x9   : > { %p813_p4 = por %p965_p1, %p39_p0  ;;  %p97_p7 = scmp.lt.s32.totalorder %s757_s12, 3 }
   0xa   : > { %p818_p6 = por %p90_p3, %p39_p0  ;;  %s759_s18 = smov [#allocation5]  }
   0xb   : > { %s969_s15 = scalar_select %p813_p4, 1, 0 }
   0xc   : > { %s970_s16 = scalar_select %p818_p6, 1, 0 }
   0xd   : > { %p823_p8 = pnand %p521_p5, %p97_p7  ;;  %s109_s19 = sshll.u32 %s759_s18, 4  ;;  %s110_s19 = int_to_ptr.vmem [resolvable:$true] %s109_s19 }
   0xe   : > { %s837_s21 = sadd.s32 1, %s757_s12   ;;  %s26_s22 = sadd.s32 1, %s753_s11 }
   0xf   : > { %s971_s17 = scalar_select %p823_p8, 1, 0 }
  0x10   : > { %p576_p9 = pneg %p823_p8  ;;  %s23_s23 = ssub.s32 %s757_s12, %s837_s21 }
  0x11   : > { %s646_s24 = scalar_lea.vmem %s110_s19, 512  ;;  %p654_p5 = scmp.lt.s32.totalorder %s110_s19, %s110_s19 }
  0x12   : > { %p832_p11 = pnand %p576_p9, %p965_p1  ;;  %p647_p13 = scmp.ne.s32.totalorder %s110_s19, %s646_s24 }
  0x13   : > { %p655_p7 = scmp.lt.s32.totalorder %s646_s24, %s646_s24 }
  0x14   : > { %p637_p12 = pneg %p832_p11 }
  0x15   : > { %p656_p10 = por %p655_p7, %p654_p5 }
  0x16   : > { %p649_p0 = pnand %p647_p13, %p637_p12 }
  0x18   : > { %p650_p3 = pneg %p649_p0 }
  0x1a   : > { %p657_p2 = pnand %p656_p10, %p650_p3 }
  0x1c   : > { %660 = shalt.err (!%p657_p2)
}
  0x1d   : > { %s760_s25 = smov 128   ;;  %s761_s26 = smov 8  }
  0x1e   : > { %579 = dma.hbm_to_vmem [thread:$0]  (!%p832_p11), %s963_s1, 512, %s110_s19, [#allocation6], %s760_s25, %s760_s25, %s761_s26  }
  0x1f   : > { %p24_p9 = scmp.eq.s32.totalorder %s23_s23, 0  ;;  %p33_p12 = scmp.ne.s32.totalorder %s753_s11, %s749_s10 }
  0x20   : > { %p34_p10 = scmp.eq.s32.totalorder %s757_s12, 0  ;;  %p589_p2 = scmp.lt.s32.totalorder %s757_s12, 2 }
  0x21   : > { %s854_s29 = scalar_select %p24_p9, %s753_s11, %s26_s22  }
  0x22   : > { %p35_p13 = por %p34_p10, %p33_p12  ;;  %p973_p0 = scmp.eq.s32.totalorder %s804_s13, 1 }
  0x23   : > { %s123_s3 = sand.u32 1, %s753_s11   ;;  %s525_s4 = sshll.u32 %s757_s12, 7 }
  0x24   : > { %p858_p3 = por %p973_p0, %p33_p12  ;;  %s524_s5 = sshll.u32 %s123_s3, 3 }
  0x25   : > { %s867_s8 = scalar_lea.hbm %s962_s0, %s525_s4  ;;  %s127_s14 = scalar_lea.vmem [#allocation2], %s524_s5 }
  0x26   : > { %s974_s30 = scalar_select %p858_p3, 1, 0 }
  0x27   : > { %s134_s18 = sshll.u32 %s127_s14, 4  ;;  %p869_p11 = pnand %p589_p2, %p35_p13  ;;  %s135_s18 = int_to_ptr.vmem [resolvable:$true] %s134_s18 }
  0x28   : > { %s124_s20 = scalar_lea.sflag [#allocation3], %s123_s3  ;;  %s661_s22 = scalar_lea.hbm %s867_s8, 128 }
  0x29   : > { %p662_p5 = scmp.ne.s32.totalorder %s867_s8, %s661_s22  ;;  %p663_p7 = pneg %p869_p11 }
  0x2a   : > { %s666_s25 = scalar_lea.hbm %s962_s0, 256  ;;  %p667_p10 = scmp.lt.s32.totalorder %s867_s8, %s962_s0 }
  0x2b   : > { %p664_p9 = pnand %p663_p7, %p662_p5  ;;  %p668_p2 = scmp.lt.s32.totalorder %s666_s25, %s661_s22 }
  0x2d   : > { %p665_p12 = pneg %p664_p9  ;;  %p669_p13 = por %p668_p2, %p667_p10 }
  0x2f   : > { %p670_p0 = pnand %p669_p13, %p665_p12 }
  0x31   : > { %673 = shalt.err (!%p670_p0)
}
  0x32   : > { %s674_s28 = scalar_lea.vmem %s135_s18, 128  ;;  %s762_s3 = smov [#allocation2]  }
  0x33   : > { %p675_p1 = scmp.ne.s32.totalorder %s135_s18, %s674_s28  ;;  %s679_s4 = sshll.u32 %s762_s3, 4  ;;  %s680_s4 = int_to_ptr.vmem [resolvable:$false] %s679_s4 }
  0x34   : > { %s681_s5 = scalar_lea.vmem %s680_s4, 256  ;;  %p682_p5 = scmp.lt.s32.totalorder %s135_s18, %s680_s4 }
  0x35   : > { %p677_p6 = pnand %p675_p1, %p663_p7  ;;  %p683_p9 = scmp.lt.s32.totalorder %s681_s5, %s674_s28 }
  0x37   : > { %p678_p3 = pneg %p677_p6  ;;  %p684_p4 = por %p683_p9, %p682_p5 }
  0x39   : > { %p685_p8 = pnand %p684_p4, %p678_p3 }
  0x3b   : > { %688 = shalt.err (!%p685_p8)
}
  0x3c   : > { %583 = dma.hbm_to_vmem [thread:$0]  (!%p869_p11), %s867_s8, 128, %s135_s18, %s124_s20  }
  0x3d   : > { %p976_p12 = scmp.ne.s32.totalorder %s971_s17, 0 }
  0x3e   : > { %s890_s6 = sand.u32 (!%p976_p12), 1, %s749_s10   ;;  %p977_p1 = scmp.ne.s32.totalorder (!%p976_p12), %s969_s15, 0 }
  0x3f   : > { %143 = sbr.rel (%p976_p12) target bundleno = 1108 (0x454), region = 28  ;;  %s527_s7 = sshll.u32 (!%p976_p12), %s890_s6, 3 }
  0x40   : > { %s146_s14 = scalar_lea.sflag (!%p976_p12), [#allocation3], %s890_s6  ;;  %s149_s22 = scalar_lea.vmem (!%p976_p12), [#allocation2], %s527_s7 }
  0x44   : > { %732 = dma.done.wait (%p977_p1), %s146_s14, 128  }
  0x45   : > { %734 = vsyncadd (%p977_p1), %s146_s14, 4294967168  ;;  %p978_p4 = scmp.eq.s32.totalorder %s804_s13, 0 }
  0x47   : > { %736 = dma.done.wait (%p978_p4), [#allocation6], 512   ;;  %p979_p6 = pmov %p978_p4 }
  0x48   : > { %v763_v0 = vmov 0.0   ;;  %vm764_vm0 = vmmov 0   ;;  %v178_v1 = vld [vmem:[#allocation5 + $0x18] sm:$0xff]  ;;  %v177_v2 = vld [vmem:[#allocation5 + $0x10] sm:$0xff]  ;;  %v176_v3 = vld [vmem:[#allocation5 + $0x8] sm:$0xff]  ;;  %vm179_vm1 = vcmask 261120   ;;  %v332_v9 = vlaneseq }
  0x49   : > { %738 = vsyncadd (%p979_p6), [#allocation6], 4294966784  ;;  %547 = vmatprep.subr.mxu0 %v763_v0  ;;  %555 = vmatprep.mubr.msk.f32.mxu0 %vm764_vm0, %v763_v0  ;;  %v175_v4 = vld [vmem:[#allocation5] sm:$0xff]  ;;  %v174_v5 = vld [vmem:[%s149_s22] sm:$0xff]  ;;  %s765_s15 = smov 120   ;;  %vm256_vm2 = vcmask 64512  }
  0x4a   : > { %558 = vmatprep.subr.mxu1 %v763_v0  ;;  %560 = vmatprep.mubr.msk.f32.mxu1 %vm764_vm0, %v763_v0  ;;  %v333_v10 = vshrl.u32 %v332_v9, 7  ;;  %v335_v11 = vand.u32 127, %v332_v9  ;;  %s766_s17 = smov 112   ;;  %s535_s8 = sshll.u32 %s804_s13, 7 }
  0x4b   : > { %548 = vmatpush3.msra.mxu0 %v178_v1  ;;  %s173_s18 = scalar_lea.vmem [#allocation7], %s527_s7  ;;  %s918_s24 = scalar_lea.hbm %s964_s2, %s535_s8 }
  0x4c   : > { %549 = vmatprep.subr.mxu0 %v763_v0  ;;  %vm336_vm3 = vcmp.le.s32.totalorder %v335_v11, %v333_v10  ;;  %s440_s19 = sshll.u32 %s173_s18, 4  ;;  %s427_s25 = scalar_lea.sflag [#allocation4], %s890_s6  ;;  %s920_s19 = int_to_ptr.vmem [resolvable:$true] %s440_s19 }
  0x4d   : > { %550 = vmatpush3.msra.mxu0 %v177_v2  ;;  %s689_s26 = scalar_lea.vmem %s920_s19, 128  ;;  %p980_p3 = scmp.ne.s32.totalorder %s974_s30, 0 }
  0x4e   : > { %551 = vmatprep.subr.mxu0 %v763_v0  ;;  %p690_p8 = scmp.ne.s32.totalorder %s920_s19, %s689_s26  ;;  %s767_s13 = smov [#allocation7]  }
  0x4f   : > { %552 = vmatpush3.msra.mxu0 %v176_v3  ;;  %s693_s27 = sshll.u32 %s767_s13, 4  ;;  %s694_s27 = int_to_ptr.vmem [resolvable:$false] %s693_s27 }
  0x50   : > { %553 = vmatprep.subr.mxu0 %v763_v0  ;;  %p691_p11 = pnand %p690_p8, %p980_p3  ;;  %s695_s28 = scalar_lea.vmem %s694_s27, 256 }
  0x51   : > { %554 = vmatpush3.msra.mxu0 %v175_v4  ;;  %p696_p10 = scmp.lt.s32.totalorder %s920_s19, %s694_s27  ;;  %p697_p2 = scmp.lt.s32.totalorder %s695_s28, %s689_s26 }
  0x52   : > { %556 = vmatmul.mubr.msk.f32.vlgmr.msra.gmra.mxu0 %vm179_vm1, %v174_v5  ;;  %p692_p7 = pneg %p691_p11 }
  0x53   : > { %p698_p13 = por %p697_p2, %p696_p10 }
  0x55   : > { %p699_p0 = pnand %p698_p13, %p692_p7 }
 0x112   : > { %v249_v6 = vpop.f32.mrf.mxu0 }
 0x113   : > { %254 = vrot.lane.b32.xlu0 %v249_v6, %s765_s15 }
 0x114   : > { %v557_v7 = vpop.f32.mrf.mxu0 }
 0x185   : > { %v255_v8 = vpop.permute.xlu0 %254 }
 0x186   : > { %559 = vmatpush3.xpose.msk.msra.mxu1 %vm256_vm2, %v255_v8 }
 0x187   : > { %563 = vmatprep.subr.mxu1 %v763_v0 }
 0x189   : > { %561 = vmatmul.mubr.msk.f32.vlgmr.msra.gmra.mxu1 %vm256_vm2, %v249_v6 }
 0x18a   : > { %565 = vmatprep.mubr.msk.f32.mxu1 %vm764_vm0, %v763_v0 }
 0x249   : > { %v327_v12 = vpop.f32.mrf.mxu1 }
 0x24a   : > { %v331_v13 = vmul.f32 0.35355338, %v327_v12 }
 0x24b   : > { %v562_v14 = vpop.f32.mrf.mxu1 }
 0x24c   : > { %v337_v15 = vsel %vm336_vm3, %v331_v13, -1e+30 }
 0x24d   : > { %v338_v16 = vsel %vm256_vm2, %v337_v15, -inf }
 0x24e   : > { %339 = vmax.xlane.f32.xlu0 %v338_v16 }
 0x2d7   : > { %v340_v17 = vpop.xlane.xlu0 %339 }
 0x2d8   : > { %v341_v18 = vsub.f32 %v337_v15, %v340_v17 }
 0x2da   : > { %v342_v19 = vmul.f32 1.442695, %v341_v18 }
 0x2dc   : > { %631 = vpow2.f32 %v342_v19 }
 0x2e9   : > { %v632_v20 = vpop.eup %631 }
 0x2ea   : > { %v344_v21 = vsel %vm256_vm2, %v632_v20, 0.0 }
 0x2eb   : > { %345 = vadd.xlane.f32.xlu1 %v344_v21 }
 0x2fc   : > { %349 = vrot.lane.b32.xlu1 %v249_v6, %s766_s17 }
 0x374   : > { %v346_v22 = vpop.xlane.xlu1 %345 }
 0x375   : > { %633 = vrcp.f32 %v346_v22 }
 0x378   : > { %v350_v23 = vpop.permute.xlu1 %349 }
 0x379   : > { %564 = vmatpush3.msra.mxu1 %v350_v23 }
 0x382   : > { %v634_v24 = vpop.eup %633 }
 0x383   : > { %v348_v25 = vmul.f32 %v634_v24, %v632_v20 }
 0x385   : > { %566 = vmatmul.mubr.msk.f32.vlgmr.msra.gmra.mxu1 %vm256_vm2, %v348_v25 }
 0x445   : > { %v421_v26 = vpop.f32.mrf.mxu1 }
 0x446   : > { %425 = vst.msk [vmem:[%s173_s18] sm:$0xff] %vm256_vm2, %v421_v26 }
 0x447   : > { %v567_v27 = vpop.f32.mrf.mxu1 }
 0x448   : > { %702 = shalt.err (!%p699_p0)
}
 0x449   : > { %s703_s3 = scalar_lea.hbm %s918_s24, 128  ;;  %s707_s6 = scalar_lea.hbm %s964_s2, 256 }
 0x44a   : > { %p704_p5 = scmp.ne.s32.totalorder %s918_s24, %s703_s3  ;;  %p708_p1 = scmp.lt.s32.totalorder %s918_s24, %s964_s2 }
 0x44b   : > { %p709_p4 = scmp.lt.s32.totalorder %s707_s6, %s703_s3 }
 0x44c   : > { %p705_p9 = pnand %p704_p5, %p980_p3 }
 0x44d   : > { %p710_p6 = por %p709_p4, %p708_p1 }
 0x44e   : > { %p706_p12 = pneg %p705_p9 }
 0x450   : > { %p711_p8 = pnand %p710_p6, %p706_p12 }
 0x452   : > { %714 = shalt.err (!%p711_p8)
}
 0x453   : > { %574 = dma.vmem_to_hbm [thread:$0]  (%p980_p3), %s920_s19, 128, %s918_s24, %s427_s25  }
 0x454 PF: > { %s452_s22 = sand.u32 1, %s745_s9   ;;  %p981_p11 = scmp.ne.s32.totalorder %s970_s16, 0 }
 0x455   : > { %p982_p7 = scmp.ge.s32.totalorder %s757_s12, 2  ;;  %s453_s15 = scalar_lea.sflag [#allocation4], %s452_s22 }
 0x457   : > { %p585_p10 = pnand %p982_p7, %p981_p11 }
 0x459   : > { %p586_p2 = pneg %p585_p10 }
 0x45b   : > { %740 = dma.done.wait (%p586_p2), %s453_s15, 128  }
 0x45c   : > { %742 = vsyncadd (%p586_p2), %s453_s15, 4294967168  ;;  %p16_p13 = scmp.ge.s32.totalorder %s837_s21, 4   ;;  %s983_s9 = smov %s749_s10 }
 0x45d   : > { %s984_s10 = smov %s753_s11  ;;  %s985_s11 = smov %s854_s29 }
 0x45e   : > { %s986_s12 = smov %s837_s21  ;;  %18 = sbr.rel (!%p16_p13) target bundleno = 6 (0x6), region = 77 }
 0x463   :  { %458 = vsyncpa [#allocation3], 1 }
 0x464   :  { %460 = vsyncpa [#allocation3 + $0x1], 1 }
 0x465   :  { %461 = vsyncpa [#allocation6], 1 }
 0x466   :  { %462 = vsyncpa [#allocation4], 1 }
 0x467   :  { %464 = vsyncpa [#allocation4 + $0x1], 1 }

</bundles_post_ra>
